<compile_context>
chip_gen: v5e
topology: v5e:2x2
jax: 0.10.0
libtpu: 0.0.40
codegen_flags: <defaults>
</compile_context>

<pallas_src>
import jax
import jax.numpy as jnp
from jax.experimental import pallas as pl
from jax.experimental.pallas import tpu as pltpu

EPS = 1e-8  # kelp consts.data.EPS


def _qnorm_kernel(stats_ref, x_ref, o_ref):
    stats = stats_ref[...]                        # (RB, 3) float32: [vmin, vmax, inv]
    vmin = stats[:, 0:1]                          # (RB, 1)
    vmax = stats[:, 1:2]                          # (RB, 1)
    inv = stats[:, 2:3]                           # (RB, 1)
    x = x_ref[...].astype(jnp.float32)            # (RB, TL), lane-dense; f32 math
    x = jnp.minimum(jnp.maximum(x, vmin), vmax)   # clamp to [vmin, vmax]
    o_ref[...] = ((x - vmin) * inv).astype(o_ref.dtype)


def _pick_tiles(R, L, itemsize, block_cap_bytes=4 << 20):
    """Pick (row_block, lane_block) for the flattened (R, L) view.

    Prefers full-width blocks (one contiguous HBM region per DMA); falls back to a
    large multiple-of-128 lane tile with cdiv-padded edge blocks otherwise. Row block
    is a dtype-aware sublane multiple (or the full dim), sized toward ~block_cap_bytes
    per block, and capped so the row axis keeps >= 2 blocks for the v7x 2-TC split.
    """
    def cdiv(a, b):
        return -(-a // b)

    sub = max(8, 32 // max(itemsize, 1))          # 8 f32, 16 bf16, 32 int8/fp8

    # Lane tile: full row if a minimal (sub-row) full-width block fits the budget.
    if L < 128 or sub * L * itemsize <= block_cap_bytes:
        TL = L
    else:
        TL = max(128, min(L, block_cap_bytes // (sub * itemsize)) // 128 * 128)

    # Row tile: grow in sublane multiples up to the block budget.
    budget_rows = max(sub, (block_cap_bytes // (TL * itemsize)) // sub * sub)
    if R <= sub:
        RB = R                                    # full dim (always legal)
    else:
        RB = min(budget_rows, cdiv(R, sub) * sub)
        # Keep >= 2 row blocks when the lane axis has a single block so the
        # "parallel" grid can be sharded across both TensorCores on v7x.
        if cdiv(L, TL) == 1 and R >= 2 * sub:
            RB = min(RB, cdiv(cdiv(R, 2), sub) * sub)
        if RB >= R:
            RB = R
    return RB, TL


def per_sample_quantile_normalize(x, q_low, q_high):
    """x: (N, C, H, W). Returns per-sample, per-channel quantile-normalized x."""
    N, C, H, W = x.shape
    R, L = N * C, H * W

    # TODO(synk): torch.quantile (sort-based order statistic) has no clean Pallas TPU
    # lowering; both quantiles are computed with ONE jnp.quantile call (single sort,
    # 'linear' interpolation = torch default) in float32, and only the streaming
    # clamp + rescale runs in the Pallas kernel.
    flat32 = x.reshape(N, C, L).astype(jnp.float32)
    q = jnp.array([q_low, q_high], dtype=jnp.float32)
    qs = jnp.quantile(flat32, q, axis=2)                      # (2, N, C), one sort
    vmin = qs[0].reshape(R, 1)                                # (R, 1) f32
    vmax = qs[1].reshape(R, 1)                                # (R, 1) f32
    inv = 1.0 / (vmax - vmin + EPS)                           # f32 reciprocal, wrapper-side
    stats = jnp.concatenate([vmin, vmax, inv], axis=1)        # (R, 3) f32

    x2 = x.reshape(R, L)
    RB, TL = _pick_tiles(R, L, x.dtype.itemsize)

    out2 = pl.pallas_call(
        _qnorm_kernel,
        out_shape=jax.ShapeDtypeStruct((R, L), x.dtype),
        grid=(pl.cdiv(R, RB), pl.cdiv(L, TL)),  # lane axis innermost: stats not re-DMA'd
        in_specs=[
            pl.BlockSpec((RB, 3), lambda i, j: (i, 0)),    # [vmin, vmax, inv] rows (f32)
            pl.BlockSpec((RB, TL), lambda i, j: (i, j)),   # x tile (lane-dense)
        ],
        out_specs=pl.BlockSpec((RB, TL), lambda i, j: (i, j)),
        compiler_params=pltpu.CompilerParams(
            dimension_semantics=("parallel", "parallel"),
            vmem_limit_bytes=32 << 20),
    )(stats, x2)

    return out2.reshape(N, C, H, W)


def _reference(x, q_low, q_high):
    N, C, H, W = x.shape
    flat = x.reshape(N, C, -1).astype(jnp.float32)
    vmin = jnp.quantile(flat, q_low, axis=2)[:, :, None, None]
    vmax = jnp.quantile(flat, q_high, axis=2)[:, :, None, None]
    xc = jnp.clip(x.astype(jnp.float32), vmin, vmax)
    return ((xc - vmin) / (vmax - vmin + EPS)).astype(x.dtype)


if __name__ == "__main__":
    key = jax.random.PRNGKey(0)
    N, C, H, W = 2, 4, 16, 16
    q_low, q_high = 0.02, 0.98

    x = jax.random.normal(key, (N, C, H, W), dtype=jnp.float32) * 5.0

    out = per_sample_quantile_normalize(x, q_low, q_high)
    out = jax.block_until_ready(out)

    ref = _reference(x, q_low, q_high)
    assert out.shape == x.shape and out.dtype == x.dtype
    # Output must lie in [0, 1] (clamped then rescaled).
    assert bool((out >= -1e-6).all()) and bool((out <= 1.0 + 1e-6).all())
    assert bool(jnp.allclose(out, ref, rtol=1e-5, atol=1e-6))

    print("KERNEL_OK")
</pallas_src>

<mosaic_0001>
module attributes {stable_mosaic.version = 11 : i64} {
  func.func @_qnorm_kernel(%arg0: i32, %arg1: i32, %arg2: memref<8x3xf32, #tpu.memory_space<vmem>>, %arg3: memref<8x256xf32, #tpu.memory_space<vmem>>, %arg4: memref<8x256xf32, #tpu.memory_space<vmem>>) attributes {dimension_semantics = [#tpu.dimension_semantics<parallel>, #tpu.dimension_semantics<parallel>], iteration_bounds = array<i64: 1, 1>, scalar_prefetch = 0 : i64, scratch_operands = 0 : i64, tpu.core_type = #tpu.core_type<tc>, window_params = [{transform_indices = @transform_0, window_bounds = array<i64: 8, 3>}, {transform_indices = @transform_1, window_bounds = array<i64: 8, 256>}, {transform_indices = @transform_2, window_bounds = array<i64: 8, 256>}]} {
    %c0 = arith.constant 0 : index
    %c0_0 = arith.constant 0 : index
    %0 = vector.load %arg2[%c0, %c0_0] : memref<8x3xf32, #tpu.memory_space<vmem>>, vector<8x3xf32>
    %1 = vector.extract_strided_slice %0 {offsets = [0, 0], sizes = [8, 1], strides = [1, 1]} : vector<8x3xf32> to vector<8x1xf32>
    %2 = vector.extract_strided_slice %0 {offsets = [0, 1], sizes = [8, 1], strides = [1, 1]} : vector<8x3xf32> to vector<8x1xf32>
    %3 = vector.extract_strided_slice %0 {offsets = [0, 2], sizes = [8, 1], strides = [1, 1]} : vector<8x3xf32> to vector<8x1xf32>
    %c0_1 = arith.constant 0 : index
    %c0_2 = arith.constant 0 : index
    %4 = vector.load %arg3[%c0_1, %c0_2] : memref<8x256xf32, #tpu.memory_space<vmem>>, vector<8x256xf32>
    %5 = vector.broadcast %1 : vector<8x1xf32> to vector<8x256xf32>
    %6 = arith.maximumf %4, %5 : vector<8x256xf32>
    %7 = vector.broadcast %2 : vector<8x1xf32> to vector<8x256xf32>
    %8 = arith.minimumf %6, %7 : vector<8x256xf32>
    %9 = vector.broadcast %1 : vector<8x1xf32> to vector<8x256xf32>
    %10 = arith.subf %8, %9 : vector<8x256xf32>
    %11 = vector.broadcast %3 : vector<8x1xf32> to vector<8x256xf32>
    %12 = arith.mulf %10, %11 : vector<8x256xf32>
    %c0_3 = arith.constant 0 : index
    %c0_4 = arith.constant 0 : index
    %13 = vector.load %arg4[%c0_3, %c0_4] : memref<8x256xf32, #tpu.memory_space<vmem>>, vector<8x256xf32>
    tpu.vector_store %arg4[%c0_3, %c0_4], %12 {strides = array<i32>} : memref<8x256xf32, #tpu.memory_space<vmem>>, vector<8x256xf32>,
    return
  }
  func.func @transform_0(%arg0: i32, %arg1: i32) -> (i32, i32) {
    %c0_i32 = arith.constant 0 : i32
    %c0_i32_0 = arith.constant 0 : i32
    return %arg0, %c0_i32 : i32, i32
  }
  func.func @transform_1(%arg0: i32, %arg1: i32) -> (i32, i32) {
    %c0_i32 = arith.constant 0 : i32
    return %arg0, %arg1 : i32, i32
  }
  func.func @transform_2(%arg0: i32, %arg1: i32) -> (i32, i32) {
    %c0_i32 = arith.constant 0 : i32
    return %arg0, %arg1 : i32, i32
  }
}

</mosaic_0001>

<bundles_post_ra>
// kernel: tpu_custom_call.1
= control target key start
LH: loop header
LB: loop body
LE: loop exit
PB: predicated region body
PF: predicated region fallthrough
CT: control target
= control target key end

     0   :  { %7 = vsyncpa [#allocation3], 0  ;;  %s159_s0 = inlined_call_operand.vmem [shape: f32[8,3], index: 0, kind: input, shape index: {}]   ;;  %s160_s1 = inlined_call_operand.hbm [shape: f32[8,256], index: 1, kind: input, shape index: {}]   ;;  %s161_s2 = inlined_call_operand.hbm [shape: f32[8,256], index: 2, kind: output, shape index: {}]  }
   0x1   :  { %8 = vsyncpa [#allocation4], 0  ;;  %s16_s11 = sshll.u32 %s160_s1, 4  ;;  %s130_s12 = smov [#allocation2]   ;;  %s17_s11 = int_to_ptr.hbm [resolvable:$true] %s16_s11 }
   0x2   :  { %s18_s13 = sshll.u32 %s130_s12, 4  ;;  %s19_s13 = int_to_ptr.vmem [resolvable:$true] %s18_s13 }
   0x3   :  { %21 = dma.hbm_to_vmem [thread:$0]  %s17_s11, 256, %s19_s13, [#allocation3]  }
   0x4   :  { %126 = dma.done.wait [#allocation3], 256  }
   0x5   :  { %127 = vsyncadd [#allocation3], 4294967040  ;;  %v131_v0 = vmov 0   ;;  %v132_v1 = vmov 2   ;;  %v26_v2 = vld [vmem:[%s159_s0] sm:$0xff]  ;;  %v133_v3 = vmov 1  }
   0x6   :  { %74 = vset.pattern.permute.xlu0 %v131_v0  ;;  %76 = vset.pattern.permute.xlu1 %v132_v1  ;;  %v27_v5 = vld [vmem:[#allocation2] sm:$0xff]  ;;  %v28_v6 = vld [vmem:[#allocation2 + $0x8] sm:$0xff]  ;;  %s134_s1 = smov [#allocation5]   ;;  %s59_s18 = sshll.u32 %s161_s2, 4  ;;  %s60_s18 = int_to_ptr.hbm [resolvable:$true] %s59_s18 }
   0x7   :  { %31 = vperm.xlu0 %74, %v26_v2   ;;  %45 = vperm.xlu1 %76, %v26_v2   ;;  %s57_s16 = sshll.u32 %s134_s1, 4  ;;  %s58_s16 = int_to_ptr.vmem [resolvable:$true] %s57_s16 }
   0xf   :  { %75 = vset.pattern.permute.xlu0 %v133_v3 }
  0x10   :  { %37 = vperm.xlu0 %75, %v26_v2  }
  0x18   :  { %77 = vset.pattern.permute.xlu0 %v132_v1 }
  0x79   :  { %v32_v4 = vpop.permute.xlu0 %31  ;;  %v46_v12 = vpop.permute.xlu1 %45 }
  0x7a   :  { %v34_v7 = vmax.f32 %v27_v5, %v32_v4  ;;  %v35_v8 = vmax.f32 %v28_v6, %v32_v4 }
  0x82   :  { %v38_v9 = vpop.permute.xlu0 %37 }
  0x83   :  { %v40_v10 = vmin.f32 %v34_v7, %v38_v9  ;;  %v41_v11 = vmin.f32 %v35_v8, %v38_v9 }
  0x85   :  { %v42_v13 = vsub.f32 %v40_v10, %v32_v4  ;;  %v43_v14 = vsub.f32 %v41_v11, %v32_v4 }
  0x87   :  { %v48_v15 = vmul.f32 %v46_v12, %v42_v13  ;;  %v49_v16 = vmul.f32 %v46_v12, %v43_v14 }
  0x89   :  { %50 = vst [vmem:[#allocation5] sm:$0xff] %v48_v15 }
  0x8a   :  { %51 = vst [vmem:[#allocation5 + $0x8] sm:$0xff] %v49_v16 }
  0x8b   :  { %62 = dma.vmem_to_hbm [thread:$0]  %s58_s16, 256, %s60_s18, [#allocation4]  }
  0x8c   :  { %128 = dma.done.wait [#allocation4], 256  }
  0x8d   :  { %129 = vsyncadd [#allocation4], 4294967040 }
  0x8e   :  { %67 = vsyncpa [#allocation3], 1 }
  0x8f   :  { %68 = vsyncpa [#allocation4], 1 }

</bundles_post_ra>
